<compile_context>
chip_gen: v7x
topology: tpu7x:2x2x1
jax: 0.10.0
libtpu: 0.0.40
codegen_flags: <defaults>
</compile_context>

<pallas_src>
import functools

import jax
import jax.numpy as jnp
import numpy as np
from jax.experimental import pallas as pl
from jax.experimental.pallas import tpu as pltpu


# ----------------------------------------------------------------------------
# Kernel 1: dynamic channel filter for the whole batch in one step.
# GAP -> grouped 1x1 conv -> GroupNorm -> MixActivation -> * exp(temp),
# then gamma/beta fold.  Output channels are in c-major order (p = c*3 + k) so
# the host reshape to (B, C, 3) is free.
# ----------------------------------------------------------------------------
def _filter_kernel(gap_ref, w_ref, m_ref, mt_ref, gnw_ref, gnb_ref,
                   alpha_ref, scale_ref, gamma3_ref, beta3_ref, o_ref,
                   *, group_size, eps):
    hi = jax.lax.Precision.HIGHEST
    gap = gap_ref[...]                                                 # (B, C)
    y = jnp.dot(gap, w_ref[...], preferred_element_type=jnp.float32,
                precision=hi)                                          # (B, 3C)

    # GroupNorm (spatial is 1x1): two-pass mean/variance via one-hot group
    # membership matmuls (avoids E[y^2]-E[y]^2 cancellation).
    inv_gs = 1.0 / group_size
    gmean = jnp.dot(y, m_ref[...], preferred_element_type=jnp.float32,
                    precision=hi) * inv_gs                             # (B, G)
    mean_pc = jnp.dot(gmean, mt_ref[...], preferred_element_type=jnp.float32,
                      precision=hi)                                    # (B, 3C)
    cen = y - mean_pc
    gvar = jnp.dot(cen * cen, m_ref[...], preferred_element_type=jnp.float32,
                   precision=hi) * inv_gs                              # (B, G)
    var_pc = jnp.dot(gvar, mt_ref[...], preferred_element_type=jnp.float32,
                     precision=hi)                                     # (B, 3C)
    yn = cen * jax.lax.rsqrt(var_pc + eps)
    yn = yn * gnw_ref[...] + gnb_ref[...]

    # MixActivation: alpha*tanh(x) + (1-alpha)*hardswish(x), then * exp(temp).
    alpha = alpha_ref[...]                                             # (1, 1)
    hsw = yn * jnp.clip(yn + 3.0, 0.0, 6.0) * (1.0 / 6.0)
    act = (alpha * jnp.tanh(yn) + (1.0 - alpha) * hsw) * scale_ref[...]

    # Fold gamma into every tap and beta into the center tap (done here so no
    # XLA ops sit between the two pallas_calls).
    o_ref[...] = act * gamma3_ref[...] + beta3_ref[...]                # (B, 3C)


# ----------------------------------------------------------------------------
# Kernel 2: the hot path.  x tile is (bt, C, tn) with HW on lanes, C on
# sublanes.  3-tap channel mix via sublane rolls; reflect padding handled by a
# 2-row edge fix-up (no full-tile iota/where).
# ----------------------------------------------------------------------------
def _enhance_kernel(x_ref, coef_ref, o_ref, *, C):
    x = x_ref[...]                               # (bt, C, tn)
    coef = coef_ref[...]                         # (bt, C, 3)
    c0 = coef[:, :, 0:1]                         # gamma*f0          (bt, C, 1)
    c1 = coef[:, :, 1:2]                         # gamma*f1 + beta   (bt, C, 1)
    c2 = coef[:, :, 2:3]                         # gamma*f2          (bt, C, 1)

    # Wrap-around +/-1 channel shifts (XLU sublane rolls).
    x_m1 = pltpu.roll(x, 1, axis=1)              # x_m1[c] = x[(c-1) mod C]
    x_p1 = pltpu.roll(x, C - 1, axis=1)          # x_p1[c] = x[(c+1) mod C]
    o_ref[...] = c0 * x_m1 + c1 * x + c2 * x_p1

    # Reflect fix-up: only rows 0 and C-1 differ from the wrap-around result.
    row0 = ((c0[:, 0:1, :] + c2[:, 0:1, :]) * x[:, 1:2, :]
            + c1[:, 0:1, :] * x[:, 0:1, :])                      # (bt, 1, tn)
    rowL = ((c0[:, C - 1:C, :] + c2[:, C - 1:C, :]) * x[:, C - 2:C - 1, :]
            + c1[:, C - 1:C, :] * x[:, C - 1:C, :])              # (bt, 1, tn)
    o_ref[:, 0:1, :] = row0
    o_ref[:, C - 1:C, :] = rowL


# ----------------------------------------------------------------------------
# Tiling heuristics (generation-portable VMEM budgets).
# ----------------------------------------------------------------------------
_VMEM_PER_BUF = 4 << 20        # 4 MiB per pipelined buffer
_LANE_CAP = 32768              # max spatial tile width


def _pick_spatial_tile(hw, c, itemsize=4):
    """Largest lane tile within the per-buffer VMEM budget.  Prefers a
    128-multiple divisor of hw; otherwise returns a budget-sized 128-multiple
    tile and the caller uses a cdiv grid (masked tail block)."""
    max_tn = (_VMEM_PER_BUF // (itemsize * c)) // 128 * 128
    max_tn = max(128, min(_LANE_CAP, max_tn))
    if hw <= max_tn:
        return hw
    best = 0
    t = 128
    while t <= max_tn:
        if hw % t == 0:
            best = t
        t += 128
    return best if best else max_tn


def _pick_batch_tile(b, c, tn, n_spatial, itemsize=4):
    """Batch several b per grid step when the whole spatial extent fits in one
    tile, but keep >= 2 grid steps so multi-TC parts (v7x) can shard."""
    if n_spatial != 1 or b <= 1:
        return 1
    per_b = c * tn * itemsize
    max_bt = max(1, _VMEM_PER_BUF // per_b)
    bt = 1
    for d in range(min(b, max_bt), 0, -1):
        if b % d == 0:
            bt = d
            break
    if b // bt < 2:                        # keep 2 parallel steps
        for d in range(b // 2, 0, -1):
            if b % d == 0:
                bt = d
                break
    return max(1, bt)


# ----------------------------------------------------------------------------
# Wrapper.
# ----------------------------------------------------------------------------
def depth_channel_enhancer(x_nchw, params):
    B, C, H, W = x_nchw.shape
    assert C >= 2, "reflect padding over channels needs C >= 2"
    HW = H * W
    x = x_nchw.reshape(B, C, HW).astype(jnp.float32)   # free reshape, no transpose
    # TODO(synk): stream x/out as bfloat16 (≈2x on the HBM roofline) if the
    # surrounding model tolerates bf16 activations; kept f32 to match module.

    G = params["groups"]
    C3, Cg, OCg = 3 * C, C // G, 3 * C // G
    conv_w = params["conv_w"].astype(jnp.float32)      # (3C, Cg)

    # Output-channel permutation to c-major order: position p = c*3 + k maps to
    # the module's channel o = k*C + c.  Makes the (B,3C) filter output reshape
    # for free into the (B, C, 3) coef layout the enhance kernel consumes.
    p = np.arange(C3)
    k_of_p, c_of_p = p % 3, p // 3
    o_of_p = k_of_p * C + c_of_p                       # (3C,) int

    # Dense block-diagonal grouped 1x1 conv weight, columns permuted: (C, 3C).
    ic = np.arange(C)
    same = (ic // Cg)[:, None] == (o_of_p // OCg)[None, :]          # (C, 3C)
    w_expand = conv_w[o_of_p[None, :], (ic % Cg)[:, None]]          # (C, 3C)
    w_perm = jnp.where(jnp.asarray(same), w_expand, 0.0)

    # One-hot group membership (compile-time constants, permuted).
    m = jnp.asarray((o_of_p[:, None] // OCg == np.arange(G)[None, :])
                    .astype(np.float32))                            # (3C, G)
    mt = m.T                                                        # (G, 3C)

    gnw = params["gn_w"].astype(jnp.float32)[o_of_p].reshape(1, C3)
    gnb = params["gn_b"].astype(jnp.float32)[o_of_p].reshape(1, C3)
    gamma_c = params["gamma"].reshape(C).astype(jnp.float32)
    beta_c = params["beta"].reshape(C).astype(jnp.float32)
    gamma3 = gamma_c[c_of_p].reshape(1, C3)
    beta3 = jnp.where(jnp.asarray(k_of_p == 1), beta_c[c_of_p], 0.0).reshape(1, C3)
    alpha = params["alpha"].reshape(1, 1).astype(jnp.float32)
    scale = jnp.exp(params["temp"]).reshape(1, 1).astype(jnp.float32)

    # Global average pool hoisted to XLA; the filter kernel only sees (B, C).
    gap = jnp.mean(x, axis=-1)                          # (B, C)

    # --- filter path: one grid step for the whole batch -----------------------
    flt = pl.pallas_call(
        functools.partial(_filter_kernel, group_size=OCg, eps=1e-5),
        out_shape=jax.ShapeDtypeStruct((B, C3), jnp.float32),
        grid=(1,),
        in_specs=[
            pl.BlockSpec((B, C), lambda i: (0, 0)),
            pl.BlockSpec((C, C3), lambda i: (0, 0)),
            pl.BlockSpec((C3, G), lambda i: (0, 0)),
            pl.BlockSpec((G, C3), lambda i: (0, 0)),
            pl.BlockSpec((1, C3), lambda i: (0, 0)),
            pl.BlockSpec((1, C3), lambda i: (0, 0)),
            pl.BlockSpec((1, 1), lambda i: (0, 0)),
            pl.BlockSpec((1, 1), lambda i: (0, 0)),
            pl.BlockSpec((1, C3), lambda i: (0, 0)),
            pl.BlockSpec((1, C3), lambda i: (0, 0)),
        ],
        out_specs=pl.BlockSpec((B, C3), lambda i: (0, 0)),
        compiler_params=pltpu.CompilerParams(
            dimension_semantics=("arbitrary",)),
    )(gap, w_perm, m, mt, gnw, gnb, alpha, scale, gamma3, beta3)

    coef = flt.reshape(B, C, 3)      # free reshape (c-major output ordering)

    # --- enhance path: HBM-streaming 3-tap channel mix ------------------------
    tn = _pick_spatial_tile(HW, C)
    n_sp = -(-HW // tn)
    bt = _pick_batch_tile(B, C, tn, n_sp)

    out = pl.pallas_call(
        functools.partial(_enhance_kernel, C=C),
        out_shape=jax.ShapeDtypeStruct((B, C, HW), jnp.float32),
        grid=(B // bt, n_sp),
        in_specs=[
            pl.BlockSpec((bt, C, tn), lambda b, i: (b, 0, i)),
            pl.BlockSpec((bt, C, 3), lambda b, i: (b, 0, 0)),
        ],
        out_specs=pl.BlockSpec((bt, C, tn), lambda b, i: (b, 0, i)),
        compiler_params=pltpu.CompilerParams(
            dimension_semantics=("parallel", "parallel"),
            vmem_limit_bytes=32 * 1024 * 1024),
    )(x, coef)

    return out.reshape(B, C, H, W)


# ----------------------------------------------------------------------------
# Pure-JAX reference matching the PyTorch module semantics exactly.
# ----------------------------------------------------------------------------
def ref_forward(x_nchw, params):
    B, C, H, W = x_nchw.shape
    G = params["groups"]
    C3, Cg, OCg = 3 * C, C // G, 3 * C // G
    gap = jnp.mean(x_nchw, axis=(2, 3))                               # (B, C)
    w_g = params["conv_w"].reshape(G, OCg, Cg)
    gap_g = gap.reshape(B, G, Cg)
    y = jnp.einsum("goi,bgi->bgo", w_g, gap_g,
                   precision=jax.lax.Precision.HIGHEST).reshape(B, C3)
    yg = y.reshape(B, G, OCg)
    mean = yg.mean(-1, keepdims=True)
    var = ((yg - mean) ** 2).mean(-1, keepdims=True)
    yn = ((yg - mean) / jnp.sqrt(var + 1e-5)).reshape(B, C3)
    yn = yn * params["gn_w"] + params["gn_b"]
    alpha = params["alpha"]
    hsw = yn * jnp.clip(yn + 3.0, 0.0, 6.0) / 6.0
    filt = (alpha * jnp.tanh(yn) + (1.0 - alpha) * hsw) * jnp.exp(params["temp"])
    filt3 = filt.reshape(B, 3, C)
    xs = jnp.transpose(x_nchw, (0, 2, 3, 1)).reshape(B, H * W, C)
    x_m1 = jnp.concatenate([xs[:, :, 1:2], xs[:, :, :-1]], axis=2)    # reflect
    x_p1 = jnp.concatenate([xs[:, :, 1:], xs[:, :, C - 2:C - 1]], axis=2)
    out = (filt3[:, 0][:, None, :] * x_m1
           + filt3[:, 1][:, None, :] * xs
           + filt3[:, 2][:, None, :] * x_p1)
    out = out * params["gamma"].reshape(1, 1, C) + xs * params["beta"].reshape(1, 1, C)
    return out.reshape(B, H, W, C).transpose(0, 3, 1, 2)


if __name__ == "__main__":
    key = jax.random.PRNGKey(0)
    B, C, H, W = 2, 32, 16, 16          # dim=32 -> groups = 32//16 = 2
    G = max(1, C // 16)
    ks = jax.random.split(key, 8)

    x = jax.random.normal(ks[0], (B, C, H, W), jnp.float32)
    # Deterministic synthetic parameters (shapes per the module __init__;
    # gamma/beta stored flat instead of (C,1,1)).
    params = {
        "groups": G,
        "conv_w": 0.2 * jax.random.normal(ks[1], (3 * C, C // G), jnp.float32),
        "gn_w": 1.0 + 0.1 * jax.random.normal(ks[2], (3 * C,), jnp.float32),
        "gn_b": 0.1 * jax.random.normal(ks[3], (3 * C,), jnp.float32),
        "alpha": jnp.array([0.75], jnp.float32),   # MixActivation alpha
        "temp": jnp.array([0.05], jnp.float32),
        "gamma": 0.5 * jax.random.normal(ks[4], (C,), jnp.float32),
        "beta": 1.0 + 0.1 * jax.random.normal(ks[5], (C,), jnp.float32),
    }

    out = depth_channel_enhancer(x, params)
    out = jax.block_until_ready(out)
    assert out.shape == (B, C, H, W)

    ref = ref_forward(x, params)
    np.testing.assert_allclose(np.asarray(out), np.asarray(ref),
                               atol=5e-3, rtol=5e-3)
    print("KERNEL_OK")
</pallas_src>

<mosaic_0001>
module attributes {stable_mosaic.version = 11 : i64} {
  func.func @_filter_kernel(%arg0: i32, %arg1: memref<2x32xf32, #tpu.memory_space<vmem>>, %arg2: memref<32x96xf32, #tpu.memory_space<vmem>>, %arg3: memref<96x2xf32, #tpu.memory_space<vmem>>, %arg4: memref<2x96xf32, #tpu.memory_space<vmem>>, %arg5: memref<1x96xf32, #tpu.memory_space<vmem>>, %arg6: memref<1x96xf32, #tpu.memory_space<vmem>>, %arg7: memref<1x1xf32, #tpu.memory_space<vmem>>, %arg8: memref<1x1xf32, #tpu.memory_space<vmem>>, %arg9: memref<1x96xf32, #tpu.memory_space<vmem>>, %arg10: memref<1x96xf32, #tpu.memory_space<vmem>>, %arg11: memref<2x96xf32, #tpu.memory_space<vmem>>) attributes {dimension_semantics = [#tpu.dimension_semantics<arbitrary>], iteration_bounds = array<i64: 1>, scalar_prefetch = 0 : i64, scratch_operands = 0 : i64, tpu.core_type = #tpu.core_type<tc>, window_params = [{pipeline_mode = #tpu.pipeline_mode<synchronous>, transform_indices = @transform_0, window_bounds = array<i64: 2, 32>}, {pipeline_mode = #tpu.pipeline_mode<synchronous>, transform_indices = @transform_1, window_bounds = array<i64: 32, 96>}, {pipeline_mode = #tpu.pipeline_mode<synchronous>, transform_indices = @transform_2, window_bounds = array<i64: 96, 2>}, {pipeline_mode = #tpu.pipeline_mode<synchronous>, transform_indices = @transform_3, window_bounds = array<i64: 2, 96>}, {pipeline_mode = #tpu.pipeline_mode<synchronous>, transform_indices = @transform_4, window_bounds = array<i64: 1, 96>}, {pipeline_mode = #tpu.pipeline_mode<synchronous>, transform_indices = @transform_5, window_bounds = array<i64: 1, 96>}, {pipeline_mode = #tpu.pipeline_mode<synchronous>, transform_indices = @transform_6, window_bounds = array<i64: 1, 1>}, {pipeline_mode = #tpu.pipeline_mode<synchronous>, transform_indices = @transform_7, window_bounds = array<i64: 1, 1>}, {pipeline_mode = #tpu.pipeline_mode<synchronous>, transform_indices = @transform_8, window_bounds = array<i64: 1, 96>}, {pipeline_mode = #tpu.pipeline_mode<synchronous>, transform_indices = @transform_9, window_bounds = array<i64: 1, 96>}, {pipeline_mode = #tpu.pipeline_mode<synchronous>, transform_indices = @transform_10, window_bounds = array<i64: 2, 96>}]} {
    %c0 = arith.constant 0 : index
    %c0_0 = arith.constant 0 : index
    %0 = vector.load %arg1[%c0, %c0_0] : memref<2x32xf32, #tpu.memory_space<vmem>>, vector<2x32xf32>
    %c0_1 = arith.constant 0 : index
    %c0_2 = arith.constant 0 : index
    %1 = vector.load %arg2[%c0_1, %c0_2] : memref<32x96xf32, #tpu.memory_space<vmem>>, vector<32x96xf32>
    %cst = arith.constant dense<0.000000e+00> : vector<2x96xf32>
    %2 = tpu.matmul %0, %1, %cst {dimension_numbers = #tpu.dot_dimension_numbers<[1], [0], [0], [1], [0, 0, 1, 1], [], []>, precision = #tpu.contract_precision<fp32>} : vector<2x32xf32>, vector<32x96xf32>, vector<2x96xf32> -> vector<2x96xf32>
    %c0_3 = arith.constant 0 : index
    %c0_4 = arith.constant 0 : index
    %3 = vector.load %arg3[%c0_3, %c0_4] : memref<96x2xf32, #tpu.memory_space<vmem>>, vector<96x2xf32>
    %cst_5 = arith.constant dense<0.000000e+00> : vector<2x2xf32>
    %4 = tpu.matmul %2, %3, %cst_5 {dimension_numbers = #tpu.dot_dimension_numbers<[1], [0], [0], [1], [0, 0, 1, 1], [], []>, precision = #tpu.contract_precision<fp32>} : vector<2x96xf32>, vector<96x2xf32>, vector<2x2xf32> -> vector<2x2xf32>
    %cst_6 = arith.constant 0.020833334 : f32
    %5 = vector.broadcast %cst_6 : f32 to vector<2x2xf32>
    %6 = arith.mulf %4, %5 : vector<2x2xf32>
    %c0_7 = arith.constant 0 : index
    %c0_8 = arith.constant 0 : index
    %7 = vector.load %arg4[%c0_7, %c0_8] : memref<2x96xf32, #tpu.memory_space<vmem>>, vector<2x96xf32>
    %cst_9 = arith.constant dense<0.000000e+00> : vector<2x96xf32>
    %8 = tpu.matmul %6, %7, %cst_9 {dimension_numbers = #tpu.dot_dimension_numbers<[1], [0], [0], [1], [0, 0, 1, 1], [], []>, precision = #tpu.contract_precision<fp32>} : vector<2x2xf32>, vector<2x96xf32>, vector<2x96xf32> -> vector<2x96xf32>
    %9 = arith.subf %2, %8 : vector<2x96xf32>
    %10 = arith.mulf %9, %9 : vector<2x96xf32>
    %c0_10 = arith.constant 0 : index
    %c0_11 = arith.constant 0 : index
    %11 = vector.load %arg3[%c0_10, %c0_11] : memref<96x2xf32, #tpu.memory_space<vmem>>, vector<96x2xf32>
    %cst_12 = arith.constant dense<0.000000e+00> : vector<2x2xf32>
    %12 = tpu.matmul %10, %11, %cst_12 {dimension_numbers = #tpu.dot_dimension_numbers<[1], [0], [0], [1], [0, 0, 1, 1], [], []>, precision = #tpu.contract_precision<fp32>} : vector<2x96xf32>, vector<96x2xf32>, vector<2x2xf32> -> vector<2x2xf32>
    %cst_13 = arith.constant 0.020833334 : f32
    %13 = vector.broadcast %cst_13 : f32 to vector<2x2xf32>
    %14 = arith.mulf %12, %13 : vector<2x2xf32>
    %c0_14 = arith.constant 0 : index
    %c0_15 = arith.constant 0 : index
    %15 = vector.load %arg4[%c0_14, %c0_15] : memref<2x96xf32, #tpu.memory_space<vmem>>, vector<2x96xf32>
    %cst_16 = arith.constant dense<0.000000e+00> : vector<2x96xf32>
    %16 = tpu.matmul %14, %15, %cst_16 {dimension_numbers = #tpu.dot_dimension_numbers<[1], [0], [0], [1], [0, 0, 1, 1], [], []>, precision = #tpu.contract_precision<fp32>} : vector<2x2xf32>, vector<2x96xf32>, vector<2x96xf32> -> vector<2x96xf32>
    %cst_17 = arith.constant 9.99999974E-6 : f32
    %17 = vector.broadcast %cst_17 : f32 to vector<2x96xf32>
    %18 = arith.addf %16, %17 : vector<2x96xf32>
    %19 = math.rsqrt %18 : vector<2x96xf32>
    %20 = arith.mulf %9, %19 : vector<2x96xf32>
    %c0_18 = arith.constant 0 : index
    %c0_19 = arith.constant 0 : index
    %21 = vector.load %arg5[%c0_18, %c0_19] : memref<1x96xf32, #tpu.memory_space<vmem>>, vector<1x96xf32>
    %22 = vector.broadcast %21 : vector<1x96xf32> to vector<2x96xf32>
    %23 = arith.mulf %20, %22 : vector<2x96xf32>
    %c0_20 = arith.constant 0 : index
    %c0_21 = arith.constant 0 : index
    %24 = vector.load %arg6[%c0_20, %c0_21] : memref<1x96xf32, #tpu.memory_space<vmem>>, vector<1x96xf32>
    %25 = vector.broadcast %24 : vector<1x96xf32> to vector<2x96xf32>
    %26 = arith.addf %23, %25 : vector<2x96xf32>
    %c0_22 = arith.constant 0 : index
    %c0_23 = arith.constant 0 : index
    %27 = vector.load %arg7[%c0_22, %c0_23] : memref<1x1xf32, #tpu.memory_space<vmem>>, vector<1x1xf32>
    %cst_24 = arith.constant 3.000000e+00 : f32
    %28 = vector.broadcast %cst_24 : f32 to vector<2x96xf32>
    %29 = arith.addf %26, %28 : vector<2x96xf32>
    %cst_25 = arith.constant 0.000000e+00 : f32
    %cst_26 = arith.constant 6.000000e+00 : f32
    %30 = vector.broadcast %cst_25 : f32 to vector<2x96xf32>
    %31 = arith.maximumf %30, %29 : vector<2x96xf32>
    %32 = vector.broadcast %cst_26 : f32 to vector<2x96xf32>
    %33 = arith.minimumf %32, %31 : vector<2x96xf32>
    %34 = arith.mulf %26, %33 : vector<2x96xf32>
    %cst_27 = arith.constant 0.166666672 : f32
    %35 = vector.broadcast %cst_27 : f32 to vector<2x96xf32>
    %36 = arith.mulf %34, %35 : vector<2x96xf32>
    %37 = math.tanh %26 : vector<2x96xf32>
    %38 = vector.broadcast %27 : vector<1x1xf32> to vector<2x96xf32>
    %39 = arith.mulf %38, %37 : vector<2x96xf32>
    %cst_28 = arith.constant 1.000000e+00 : f32
    %40 = vector.broadcast %cst_28 : f32 to vector<1x1xf32>
    %41 = arith.subf %40, %27 : vector<1x1xf32>
    %42 = vector.broadcast %41 : vector<1x1xf32> to vector<2x96xf32>
    %43 = arith.mulf %42, %36 : vector<2x96xf32>
    %44 = arith.addf %39, %43 : vector<2x96xf32>
    %c0_29 = arith.constant 0 : index
    %c0_30 = arith.constant 0 : index
    %45 = vector.load %arg8[%c0_29, %c0_30] : memref<1x1xf32, #tpu.memory_space<vmem>>, vector<1x1xf32>
    %46 = vector.broadcast %45 : vector<1x1xf32> to vector<2x96xf32>
    %47 = arith.mulf %44, %46 : vector<2x96xf32>
    %c0_31 = arith.constant 0 : index
    %c0_32 = arith.constant 0 : index
    %48 = vector.load %arg9[%c0_31, %c0_32] : memref<1x96xf32, #tpu.memory_space<vmem>>, vector<1x96xf32>
    %49 = vector.broadcast %48 : vector<1x96xf32> to vector<2x96xf32>
    %50 = arith.mulf %47, %49 : vector<2x96xf32>
    %c0_33 = arith.constant 0 : index
    %c0_34 = arith.constant 0 : index
    %51 = vector.load %arg10[%c0_33, %c0_34] : memref<1x96xf32, #tpu.memory_space<vmem>>, vector<1x96xf32>
    %52 = vector.broadcast %51 : vector<1x96xf32> to vector<2x96xf32>
    %53 = arith.addf %50, %52 : vector<2x96xf32>
    %c0_35 = arith.constant 0 : index
    %c0_36 = arith.constant 0 : index
    %54 = vector.load %arg11[%c0_35, %c0_36] : memref<2x96xf32, #tpu.memory_space<vmem>>, vector<2x96xf32>
    tpu.vector_store %arg11[%c0_35, %c0_36], %53 {strides = array<i32>} : memref<2x96xf32, #tpu.memory_space<vmem>>, vector<2x96xf32>,
    return
  }
  func.func @transform_0(%arg0: i32) -> (i32, i32) {
    %c0_i32 = arith.constant 0 : i32
    %c0_i32_0 = arith.constant 0 : i32
    %c0_i32_1 = arith.constant 0 : i32
    return %c0_i32, %c0_i32_0 : i32, i32
  }
  func.func @transform_1(%arg0: i32) -> (i32, i32) {
    %c0_i32 = arith.constant 0 : i32
    %c0_i32_0 = arith.constant 0 : i32
    %c0_i32_1 = arith.constant 0 : i32
    return %c0_i32, %c0_i32_0 : i32, i32
  }
  func.func @transform_2(%arg0: i32) -> (i32, i32) {
    %c0_i32 = arith.constant 0 : i32
    %c0_i32_0 = arith.constant 0 : i32
    %c0_i32_1 = arith.constant 0 : i32
    return %c0_i32, %c0_i32_0 : i32, i32
  }
  func.func @transform_3(%arg0: i32) -> (i32, i32) {
    %c0_i32 = arith.constant 0 : i32
    %c0_i32_0 = arith.constant 0 : i32
    %c0_i32_1 = arith.constant 0 : i32
    return %c0_i32, %c0_i32_0 : i32, i32
  }
  func.func @transform_4(%arg0: i32) -> (i32, i32) {
    %c0_i32 = arith.constant 0 : i32
    %c0_i32_0 = arith.constant 0 : i32
    %c0_i32_1 = arith.constant 0 : i32
    return %c0_i32, %c0_i32_0 : i32, i32
  }
  func.func @transform_5(%arg0: i32) -> (i32, i32) {
    %c0_i32 = arith.constant 0 : i32
    %c0_i32_0 = arith.constant 0 : i32
    %c0_i32_1 = arith.constant 0 : i32
    return %c0_i32, %c0_i32_0 : i32, i32
  }
  func.func @transform_6(%arg0: i32) -> (i32, i32) {
    %c0_i32 = arith.constant 0 : i32
    %c0_i32_0 = arith.constant 0 : i32
    %c0_i32_1 = arith.constant 0 : i32
    return %c0_i32, %c0_i32_0 : i32, i32
  }
  func.func @transform_7(%arg0: i32) -> (i32, i32) {
    %c0_i32 = arith.constant 0 : i32
    %c0_i32_0 = arith.constant 0 : i32
    %c0_i32_1 = arith.constant 0 : i32
    return %c0_i32, %c0_i32_0 : i32, i32
  }
  func.func @transform_8(%arg0: i32) -> (i32, i32) {
    %c0_i32 = arith.constant 0 : i32
    %c0_i32_0 = arith.constant 0 : i32
    %c0_i32_1 = arith.constant 0 : i32
    return %c0_i32, %c0_i32_0 : i32, i32
  }
  func.func @transform_9(%arg0: i32) -> (i32, i32) {
    %c0_i32 = arith.constant 0 : i32
    %c0_i32_0 = arith.constant 0 : i32
    %c0_i32_1 = arith.constant 0 : i32
    return %c0_i32, %c0_i32_0 : i32, i32
  }
  func.func @transform_10(%arg0: i32) -> (i32, i32) {
    %c0_i32 = arith.constant 0 : i32
    %c0_i32_0 = arith.constant 0 : i32
    %c0_i32_1 = arith.constant 0 : i32
    return %c0_i32, %c0_i32_0 : i32, i32
  }
}

</mosaic_0001>

<bundles_post_ra>
// kernel: tpu_custom_call.1
= control target key start
LH: loop header
LB: loop body
LE: loop exit
PB: predicated region body
PF: predicated region fallthrough
CT: control target
= control target key end

     0   :  { %s4397_s0 = inlined_call_operand.vmem [shape: f32[2,32], index: 0, kind: input, shape index: {}]   ;;  %s4398_s1 = inlined_call_operand.vmem [shape: f32[32,96], index: 1, kind: input, shape index: {}]   ;;  %s4399_s2 = inlined_call_operand.vmem [shape: f32[96,2], index: 2, kind: input, shape index: {}]   ;;  %s4400_s3 = inlined_call_operand.vmem [shape: f32[2,96], index: 3, kind: input, shape index: {}]   ;;  %s4401_s4 = inlined_call_operand.vmem [shape: f32[1,96], index: 4, kind: input, shape index: {}]   ;;  %s4402_s5 = inlined_call_operand.vmem [shape: f32[1,96], index: 5, kind: input, shape index: {}]   ;;  %s4403_s6 = inlined_call_operand.<no memory space> [shape: f32[1,1], index: 6, kind: input, shape index: {}]   ;;  %s4404_s8 = inlined_call_operand.vmem [shape: f32[1,96], index: 8, kind: input, shape index: {}]   ;;  %s4405_s9 = inlined_call_operand.vmem [shape: f32[1,96], index: 9, kind: input, shape index: {}]   ;;  %s4406_s10 = inlined_call_operand.hbm [shape: f32[2,96], index: 10, kind: output, shape index: {}]   ;;  %s4407_s7 = inlined_call_operand.<no memory space> [shape: f32[1,1], index: 7, kind: input, shape index: {}]  }
   0x1   :  { %v15_v0 = vstv %s4403_s6  ;;  %v17_v1 = vstv %s4407_s7 }
   0x2   :  { %16 = vst [vmem:[#allocation2] sm:$0x1] %v15_v0  ;;  %18 = vst [vmem:[#allocation3] sm:$0x1] %v17_v1 }
   0x3   :  { %v41_v2 = vld [vmem:[%s4398_s1] sm:$0xff]  ;;  %v42_v3 = vld [vmem:[%s4398_s1 + $0x8] sm:$0xff]  ;;  %v43_v4 = vld [vmem:[%s4398_s1 + $0x10] sm:$0xff]  ;;  %v3731_v5 = vmov 0.0|0.0   ;;  %vm3732_vm0 = vmmov 0   ;;  %v3733_v10 = vmov 0.0  }
   0x4   :  { %3394 = vmatprep.subr.bf16.mxu0 %v3731_v5  ;;  %v50_v6 = vand.u32 4294901760, %v41_v2  ;;  %v53_v7 = vand.u32 4294901760, %v42_v3  ;;  %v44_v8 = vld [vmem:[%s4398_s1 + $0x18] sm:$0xff]  ;;  %v56_v9 = vand.u32 4294901760, %v43_v4  ;;  %2952 = vmatprep.mubr.msk.f32.mxu0 %vm3732_vm0, %v3733_v10  ;;  %v40_v11 = vld [vmem:[%s4397_s0] sm:$0x3] }
   0x5   :  { %v59_v12 = vand.u32 4294901760, %v44_v8  ;;  %vm45_vm1 = vcmask 261120   ;;  %3430 = vmatprep.subr.bf16.mxu1 %v3731_v5  ;;  %v3819_v13 = vld [vmem:[%s4399_s2] sm:$0xff]  ;;  %3034 = vmatprep.mubr.msk.f32.mxu1 %vm3732_vm0, %v3733_v10  ;;  %v3834_v18 = vld [vmem:[%s4399_s2 + $0x8] sm:$0xff] }
   0x6   :  { %v3823_v14 = vpack.c.bf16 %v53_v7, %v50_v6  ;;  %v3825_v15 = vsub.f32 %v41_v2, %v50_v6  ;;  %v3827_v16 = vsub.f32 %v42_v3, %v53_v7  ;;  %v3829_v17 = vsub.f32 %v43_v4, %v56_v9 }
   0x7   :  { %v3836_v19 = vpack.c.bf16 %v59_v12, %v56_v9  ;;  %v3838_v20 = vsub.f32 %v44_v8, %v59_v12  ;;  %v47_v21 = vsel %vm45_vm1, %v40_v11, 0  ;;  %v551_v22 = vand.u32 4294901760, %v3819_v13 }
   0x8   :  { %19 = vsyncpa [#allocation5], 0  ;;  %3396 = vmatpush3.bf16.msra.mxu0 %v3823_v14  ;;  %v3842_v23 = vand.u32 4294901760, %v47_v21  ;;  %v131_v24 = vand.u32 4294901760, %v3825_v15  ;;  %v138_v25 = vand.u32 4294901760, %v3827_v16  ;;  %v145_v26 = vand.u32 4294901760, %v3829_v17 }
   0x9   :  { %3397 = vmatprep.subr.bf16.mxu0 %v3731_v5  ;;  %v152_v27 = vand.u32 4294901760, %v3838_v20  ;;  %v554_v28 = vand.u32 4294901760, %v3834_v18  ;;  %v3856_v32 = vld [vmem:[%s4399_s2 + $0x10] sm:$0xff]  ;;  %v3861_v33 = vld [vmem:[%s4399_s2 + $0x18] sm:$0xff]  ;;  %v3866_v34 = vld [vmem:[%s4399_s2 + $0x20] sm:$0xff]  ;;  %v3407_v54 = vpack.c.bf16 %v3827_v16, %v3825_v15  ;;  %v3410_v55 = vpack.c.bf16 %v3838_v20, %v3829_v17  ;;  %s3735_s29 = smov [#allocation4]  }
   0xa   :  { %v119_v29 = vsub.f32 %v47_v21, %v3842_v23  ;;  %v132_v30 = vsub.f32 %v3825_v15, %v131_v24  ;;  %v139_v31 = vsub.f32 %v3827_v16, %v138_v25  ;;  %v146_v35 = vsub.f32 %v3829_v17, %v145_v26  ;;  %v3879_v38 = vld [vmem:[%s4399_s2 + $0x28] sm:$0xff]  ;;  %v540_v58 = vld [vmem:[%s4399_s2 + $0x30] sm:$0xff]  ;;  %v541_v59 = vld [vmem:[%s4399_s2 + $0x38] sm:$0xff]  ;;  %s2721_s30 = sshll.u32 %s3735_s29, 4  ;;  %s2722_s30 = int_to_ptr.vmem [resolvable:$true] %s2721_s30 }
   0xb   :  { %v153_v36 = vsub.f32 %v3838_v20, %v152_v27  ;;  %v3874_v37 = vpack.c.bf16 %v554_v28, %v551_v22  ;;  %v557_v42 = vand.u32 4294901760, %v3856_v32  ;;  %v560_v43 = vand.u32 4294901760, %v3861_v33  ;;  %v542_v63 = vld [vmem:[%s4399_s2 + $0x40] sm:$0xff]  ;;  %v543_v0 = vld [vmem:[%s4399_s2 + $0x48] sm:$0xff]  ;;  %v544_v4 = vld [vmem:[%s4399_s2 + $0x50] sm:$0xff]  ;;  %s3707_s11 = scalar_lea.vmem %s2722_s30, 32  ;;  %p3712_p1 = scmp.lt.s32.totalorder %s2722_s30, %s2722_s30 }
   0xc   :  { %3399 = vmatpush3.bf16.msra.mxu0 %v3836_v19  ;;  %v120_v39 = vand.u32 4294901760, %v119_v29  ;;  %v133_v40 = vand.u32 4294901760, %v132_v30  ;;  %v140_v41 = vand.u32 4294901760, %v139_v31  ;;  %v563_v44 = vand.u32 4294901760, %v3866_v34  ;;  %v545_v6 = vld [vmem:[%s4399_s2 + $0x58] sm:$0xff]  ;;  %p3708_p0 = scmp.ne.s32.totalorder %s2722_s30, %s3707_s11  ;;  %p3713_p2 = scmp.lt.s32.totalorder %s3707_s11, %s3707_s11 }
   0xd   :  { %3400 = vmatprep.subr.bf16.mxu0 %v3731_v5  ;;  %3432 = vmatpush3.bf16.msra.mxu1 %v3874_v37  ;;  %v566_v46 = vand.u32 4294901760, %v3879_v38  ;;  %v147_v48 = vand.u32 4294901760, %v146_v35  ;;  %v154_v49 = vand.u32 4294901760, %v153_v36  ;;  %v3893_v50 = vpack.c.bf16 %v560_v43, %v557_v42 }
   0xe   :  { %v121_v45 = vsub.f32 %v119_v29, %v120_v39  ;;  %3433 = vmatprep.subr.bf16.mxu1 %v3731_v5  ;;  %v3401_v47 = vpack.c.bf16 %v140_v41, %v133_v40  ;;  %v3419_v56 = vpack.c.bf16 %v138_v25, %v131_v24  ;;  %v3422_v57 = vpack.c.bf16 %v152_v27, %v145_v26  ;;  %p3714_p3 = por %p3713_p2, %p3712_p1 }
   0xf   :  { %v3900_v52 = vpack.c.bf16 %v566_v46, %v563_v44  ;;  %v3404_v53 = vpack.c.bf16 %v154_v49, %v147_v48  ;;  %v569_v60 = vand.u32 4294901760, %v540_v58  ;;  %v572_v61 = vand.u32 4294901760, %v541_v59 }
  0x10   :  { %v122_v51 = vand.u32 4294901760, %v121_v45  ;;  %v575_v1 = vand.u32 4294901760, %v542_v63  ;;  %v578_v2 = vand.u32 4294901760, %v543_v0  ;;  %v581_v7 = vand.u32 4294901760, %v544_v4  ;;  %p3715_p4 = pnand %p3714_p3, %p3708_p0 }
  0x11   :  { %3435 = vmatpush3.bf16.msra.mxu1 %v3893_v50  ;;  %v3944_v62 = vpack.c.bf16 %v572_v61, %v569_v60  ;;  %v584_v8 = vand.u32 4294901760, %v545_v6  ;;  %v3968_v11 = vsub.f32 %v540_v58, %v569_v60  ;;  %v3970_v12 = vsub.f32 %v541_v59, %v572_v61 }
  0x12   :  { %2953 = vmatmul.mubr.f32.vlgmr.msra.gmra.mrb[0].mxu0 %v122_v51  ;;  %3436 = vmatprep.subr.bf16.mxu1 %v3731_v5  ;;  %v3954_v3 = vpack.c.bf16 %v578_v2, %v575_v1  ;;  %v3977_v17 = vsub.f32 %v542_v63, %v575_v1  ;;  %v4037_v60 = vsub.f32 %v3856_v32, %v557_v42  ;;  %vm546_vm2 = vcmask 785408  }
  0x13   :  { %3402 = vmatpush3.bf16.msra.mxu0 %v3401_v47  ;;  %2963 = vmatprep.mubr.msk.f32.mxu0 %vm3732_vm0, %v3733_v10  ;;  %v3964_v9 = vpack.c.bf16 %v584_v8, %v581_v7  ;;  %v689_v15 = vand.u32 4294901760, %v3970_v12  ;;  %v3994_v30 = vsub.f32 %v545_v6, %v584_v8  ;;  %v4042_v61 = vsub.f32 %v3861_v33, %v560_v43 }
  0x14   :  { %3403 = vmatprep.subr.bf16.mxu0 %v3731_v5  ;;  %v4059_v43 = vsub.f32 %v3866_v34, %v563_v44  ;;  %v4064_v63 = vsub.f32 %v3879_v38, %v566_v46  ;;  %vm1145_vm3 = vcmask 1041408   ;;  %vm1141_vm4 = vcmask 15360  }
  0x15   :  { %3438 = vmatpush3.bf16.msra.mxu1 %v3900_v52  ;;  %v690_v20 = vsub.f32 %v3970_v12, %v689_v15  ;;  %v717_v40 = vand.u32 4294901760, %v3994_v30  ;;  %v661_v33 = vand.u32 4294901760, %v4042_v61  ;;  %vm2713_vm5 = vcmask 779264  }
  0x16   :  { %3439 = vmatprep.subr.bf16.mxu1 %v3731_v5  ;;  %v668_v44 = vand.u32 4294901760, %v4059_v43  ;;  %v675_v38 = vand.u32 4294901760, %v4064_v63 }
  0x17   :  { %3405 = vmatpush3.bf16.msra.mxu0 %v3404_v53  ;;  %v691_v25 = vand.u32 4294901760, %v690_v20  ;;  %v718_v47 = vsub.f32 %v3994_v30, %v717_v40  ;;  %v4012_v53 = vpack.c.bf16 %v3970_v12, %v3968_v11  ;;  %v662_v34 = vsub.f32 %v4042_v61, %v661_v33  ;;  %v1140_v12 = vld [vmem:[%s4400_s3] sm:$0x3] }
  0x18   :  { %3406 = vmatprep.subr.bf16.mxu0 %v3731_v5 }
  0x19   :  { %3441 = vmatpush3.bf16.msra.mxu1 %v3944_v62  ;;  %v719_v49 = vand.u32 4294901760, %v718_v47  ;;  %v663_v20 = vand.u32 4294901760, %v662_v34 }
  0x1a   :  { %2964 = vmatmul.mubr.f32.vlgmr.msra.gmra.mrb[0].mxu0 %v3842_v23  ;;  %3442 = vmatprep.subr.bf16.mxu1 %v3731_v5 }
  0x1b   :  { %3408 = vmatpush3.bf16.msra.mxu0 %v3407_v54  ;;  %2974 = vmatprep.mubr.msk.f32.mxu0 %vm3732_vm0, %v3733_v10 }
  0x1c   :  { %3409 = vmatprep.subr.bf16.mxu0 %v3731_v5 }
  0x1d   :  { %3444 = vmatpush3.bf16.msra.mxu1 %v3954_v3 }
  0x1e   :  { %3445 = vmatprep.subr.bf16.mxu1 %v3731_v5 }
  0x1f   :  { %3411 = vmatpush3.bf16.msra.mxu0 %v3410_v55 }
  0x20   :  { %3412 = vmatprep.subr.bf16.mxu0 %v3731_v5 }
  0x21   :  { %3447 = vmatpush3.bf16.msra.mxu1 %v3964_v9 }
  0x22   :  { %2975 = vmatmul.mubr.f32.vlgmr.msra.gmra.mrb[0].mxu0 %v119_v29  ;;  %3448 = vmatprep.subr.bf16.mxu1 %v3731_v5  ;;  %v3992_v29 = vsub.f32 %v544_v4, %v581_v7 }
  0x23   :  { %3414 = vmatpush3.bf16.msra.mxu0 %v3823_v14  ;;  %2985 = vmatprep.mubr.msk.f32.mxu0 %vm3732_vm0, %v3733_v10 }
  0x24   :  { %3415 = vmatprep.subr.bf16.mxu0 %v3731_v5  ;;  %v4020_v55 = vpack.c.bf16 %v3994_v30, %v3992_v29 }
  0x27   :  { %3417 = vmatpush3.bf16.msra.mxu0 %v3836_v19 }
  0x28   :  { %3418 = vmatprep.subr.bf16.mxu0 %v3731_v5 }
  0x2a   :  { %2986 = vmatmul.mubr.f32.vlgmr.msra.gmra.mrb[0].mxu0 %v120_v39  ;;  %v710_v39 = vand.u32 4294901760, %v3992_v29 }
  0x2b   :  { %3420 = vmatpush3.bf16.msra.mxu0 %v3419_v56  ;;  %2996 = vmatprep.mubr.msk.f32.mxu0 %vm3732_vm0, %v3733_v10  ;;  %v4025_v56 = vsub.f32 %v3819_v13, %v551_v22 }
  0x2c   :  { %3421 = vmatprep.subr.bf16.mxu0 %v3731_v5  ;;  %v711_v45 = vsub.f32 %v3992_v29, %v710_v39 }
  0x2d   :  { %v640_v58 = vand.u32 4294901760, %v4025_v56 }
  0x2e   :  { %v712_v48 = vand.u32 4294901760, %v711_v45 }
  0x2f   :  { %3423 = vmatpush3.bf16.msra.mxu0 %v3422_v57  ;;  %v4030_v57 = vsub.f32 %v3834_v18, %v554_v28  ;;  %v641_v18 = vsub.f32 %v4025_v56, %v640_v58  ;;  %v654_v28 = vand.u32 4294901760, %v4037_v60 }
  0x30   :  { %3424 = vmatprep.subr.bf16.mxu0 %v3731_v5  ;;  %v4008_v51 = vpack.c.bf16 %v719_v49, %v712_v48  ;;  %v4115_v48 = vpack.c.bf16 %v4042_v61, %v4037_v60  ;;  %v4123_v49 = vpack.c.bf16 %v4064_v63, %v4059_v43 }
  0x31   :  { %v647_v59 = vand.u32 4294901760, %v4030_v57  ;;  %v655_v6 = vsub.f32 %v4037_v60, %v654_v28  ;;  %v4108_v47 = vpack.c.bf16 %v4030_v57, %v4025_v56  ;;  %v4170_v56 = vpack.c.bf16 %v675_v38, %v668_v44 }
  0x32   :  { %2997 = vmatmul.mubr.f32.vlgmr.msra.gmra.mrb[0].mxu0 %v3842_v23 }
  0x33   :  { %3426 = vmatpush3.bf16.msra.mxu0 %v3823_v14  ;;  %3007 = vmatprep.mubr.msk.f32.mxu0 %vm3732_vm0, %v3733_v10  ;;  %v682_v14 = vand.u32 4294901760, %v3968_v11  ;;  %v648_v22 = vsub.f32 %v4030_v57, %v647_v59 }
  0x34   :  { %3427 = vmatprep.subr.bf16.mxu0 %v3731_v5 }
  0x35   :  { %v683_v16 = vsub.f32 %v3968_v11, %v682_v14  ;;  %v649_v4 = vand.u32 4294901760, %v648_v22  ;;  %v4160_v22 = vpack.c.bf16 %v661_v33, %v654_v28  ;;  %v4178_v57 = vpack.c.bf16 %v689_v15, %v682_v14 }
  0x36   :  { %v4194_v11 = vpack.c.bf16 %v717_v40, %v710_v39  ;;  %v1147_v14 = vsel %vm1145_vm3, %v1140_v12, 0 }
  0x37   :  { %3429 = vmatpush3.bf16.msra.mxu0 %v3836_v19  ;;  %v3979_v19 = vsub.f32 %v543_v0, %v578_v2  ;;  %v684_v21 = vand.u32 4294901760, %v683_v16  ;;  %v642_v2 = vand.u32 4294901760, %v641_v18  ;;  %v656_v16 = vand.u32 4294901760, %v655_v6 }
  0x38   :  { %3172 = vmatprep.subr.mxu0 %v3733_v10  ;;  %v4152_v18 = vpack.c.bf16 %v647_v59, %v640_v58  ;;  %v4232_v15 = vand.u32 4294901760, %v1147_v14 }
  0x39   :  { %v703_v24 = vand.u32 4294901760, %v3979_v19  ;;  %v3996_v31 = vpack.c.bf16 %v691_v25, %v684_v21  ;;  %v4016_v54 = vpack.c.bf16 %v3979_v19, %v3977_v17  ;;  %v4081_v8 = vpack.c.bf16 %v649_v4, %v642_v2 }
  0x3a   :  { %3008 = vmatmul.mubr.f32.vlgmr.msra.gmra.mrb[0].mxu0 %v3842_v23  ;;  %v696_v23 = vand.u32 4294901760, %v3977_v17  ;;  %v669_v21 = vsub.f32 %v4059_v43, %v668_v44  ;;  %v676_v25 = vsub.f32 %v4064_v63, %v675_v38 }
  0x3b   :  { %3174 = vmatprep.mubr.msk.f32.mxu0 %vm3732_vm0, %v3733_v10  ;;  %v704_v27 = vsub.f32 %v3979_v19, %v703_v24  ;;  %3173 = vmatpush3.msra.mxu0 %v4232_v15 }
  0x3c   :  { %v697_v26 = vsub.f32 %v3977_v17, %v696_v23  ;;  %v4186_v58 = vpack.c.bf16 %v703_v24, %v696_v23  ;;  %3177 = vmatprep.subr.mxu0 %v3733_v10  ;;  %v4237_v17 = vsub.f32 %v1147_v14, %v4232_v15 }
  0x3d   :  { %v705_v36 = vand.u32 4294901760, %v704_v27  ;;  %v4090_v27 = vpack.c.bf16 %v663_v20, %v656_v16 }
  0x3e   :  { %v698_v35 = vand.u32 4294901760, %v697_v26  ;;  %v4241_v30 = vand.u32 4294901760, %v4237_v17 }
  0x40   :  { %v4000_v41 = vpack.c.bf16 %v705_v36, %v698_v35  ;;  %v670_v35 = vand.u32 4294901760, %v669_v21  ;;  %v677_v36 = vand.u32 4294901760, %v676_v25  ;;  %v1229_v59 = vsub.f32 %v4237_v17, %v4241_v30 }
  0x42   :  { %v4096_v45 = vpack.c.bf16 %v677_v36, %v670_v35  ;;  %v4245_v28 = vand.u32 4294901760, %v1229_v59  ;;  %v2729_v35 = vld [vmem:[%s4401_s4] ss:$0 sm:$0xff] }
 0x10d   :  { %v4044_v13 = vpop.f32.mrb[0].mxu0 }
 0x10e   :  { %v548_v32 = vsel %vm546_vm2, %v4044_v13, 0  ;;  %v3009_v42 = vpop.f32.mrb[1].mxu0 }
 0x10f   :  { %v4066_v0 = vand.u32 4294901760, %v548_v32 }
 0x111   :  { %v4069_v1 = vsub.f32 %v548_v32, %v4066_v0 }
 0x113   :  { %v629_v46 = vand.u32 4294901760, %v4069_v1 }
 0x115   :  { %v630_v7 = vsub.f32 %v4069_v1, %v629_v46 }
 0x117   :  { %v631_v26 = vand.u32 4294901760, %v630_v7 }
 0x119   :  { %3035 = vmatmul.mubr.f32.vlgmr.msra.gmra.mrb[0].mxu1 %v631_v26 }
 0x11a   :  { %3450 = vmatpush3.bf16.msra.mxu1 %v4081_v8  ;;  %3061 = vmatprep.mubr.msk.f32.mxu1 %vm3732_vm0, %v3733_v10 }
 0x11b   :  { %3451 = vmatprep.subr.bf16.mxu1 %v3731_v5 }
 0x11e   :  { %3453 = vmatpush3.bf16.msra.mxu1 %v4090_v27 }
 0x11f   :  { %3454 = vmatprep.subr.bf16.mxu1 %v3731_v5 }
 0x122   :  { %3456 = vmatpush3.bf16.msra.mxu1 %v4096_v45 }
 0x123   :  { %3457 = vmatprep.subr.bf16.mxu1 %v3731_v5 }
 0x126   :  { %3459 = vmatpush3.bf16.msra.mxu1 %v3996_v31 }
 0x127   :  { %3460 = vmatprep.subr.bf16.mxu1 %v3731_v5 }
 0x12a   :  { %3462 = vmatpush3.bf16.msra.mxu1 %v4000_v41 }
 0x12b   :  { %3463 = vmatprep.subr.bf16.mxu1 %v3731_v5 }
 0x12e   :  { %3465 = vmatpush3.bf16.msra.mxu1 %v4008_v51 }
 0x12f   :  { %3466 = vmatprep.subr.bf16.mxu1 %v3731_v5 }
 0x131   :  { %3062 = vmatmul.mubr.f32.vlgmr.msra.gmra.mrb[0].mxu1 %v4066_v0 }
 0x132   :  { %3468 = vmatpush3.bf16.msra.mxu1 %v4108_v47  ;;  %3088 = vmatprep.mubr.msk.f32.mxu1 %vm3732_vm0, %v3733_v10 }
 0x133   :  { %3469 = vmatprep.subr.bf16.mxu1 %v3731_v5 }
 0x136   :  { %3471 = vmatpush3.bf16.msra.mxu1 %v4115_v48 }
 0x137   :  { %3472 = vmatprep.subr.bf16.mxu1 %v3731_v5 }
 0x13a   :  { %3474 = vmatpush3.bf16.msra.mxu1 %v4123_v49 }
 0x13b   :  { %3475 = vmatprep.subr.bf16.mxu1 %v3731_v5 }
 0x13e   :  { %3477 = vmatpush3.bf16.msra.mxu1 %v4012_v53 }
 0x13f   :  { %3478 = vmatprep.subr.bf16.mxu1 %v3731_v5 }
 0x142   :  { %3480 = vmatpush3.bf16.msra.mxu1 %v4016_v54 }
 0x143   :  { %3481 = vmatprep.subr.bf16.mxu1 %v3731_v5 }
 0x146   :  { %3483 = vmatpush3.bf16.msra.mxu1 %v4020_v55 }
 0x147   :  { %3484 = vmatprep.subr.bf16.mxu1 %v3731_v5 }
 0x149   :  { %3089 = vmatmul.mubr.f32.vlgmr.msra.gmra.mrb[0].mxu1 %v4069_v1 }
 0x14a   :  { %3486 = vmatpush3.bf16.msra.mxu1 %v3874_v37  ;;  %3115 = vmatprep.mubr.msk.f32.mxu1 %vm3732_vm0, %v3733_v10 }
 0x14b   :  { %3487 = vmatprep.subr.bf16.mxu1 %v3731_v5 }
 0x14e   :  { %3489 = vmatpush3.bf16.msra.mxu1 %v3893_v50 }
 0x14f   :  { %3490 = vmatprep.subr.bf16.mxu1 %v3731_v5 }
 0x152   :  { %3492 = vmatpush3.bf16.msra.mxu1 %v3900_v52 }
 0x153   :  { %3493 = vmatprep.subr.bf16.mxu1 %v3731_v5 }
 0x156   :  { %3495 = vmatpush3.bf16.msra.mxu1 %v3944_v62 }
 0x157   :  { %3496 = vmatprep.subr.bf16.mxu1 %v3731_v5 }
 0x15a   :  { %3498 = vmatpush3.bf16.msra.mxu1 %v3954_v3 }
 0x15b   :  { %3499 = vmatprep.subr.bf16.mxu1 %v3731_v5 }
 0x15e   :  { %3501 = vmatpush3.bf16.msra.mxu1 %v3964_v9 }
 0x15f   :  { %3502 = vmatprep.subr.bf16.mxu1 %v3731_v5 }
 0x161   :  { %3116 = vmatmul.mubr.f32.vlgmr.msra.gmra.mrb[0].mxu1 %v629_v46 }
 0x162   :  { %3504 = vmatpush3.bf16.msra.mxu1 %v4152_v18  ;;  %3142 = vmatprep.mubr.msk.f32.mxu1 %vm3732_vm0, %v3733_v10 }
 0x163   :  { %3505 = vmatprep.subr.bf16.mxu1 %v3731_v5 }
 0x166   :  { %3507 = vmatpush3.bf16.msra.mxu1 %v4160_v22 }
 0x167   :  { %3508 = vmatprep.subr.bf16.mxu1 %v3731_v5 }
 0x16a   :  { %3510 = vmatpush3.bf16.msra.mxu1 %v4170_v56 }
 0x16b   :  { %3511 = vmatprep.subr.bf16.mxu1 %v3731_v5 }
 0x16e   :  { %3513 = vmatpush3.bf16.msra.mxu1 %v4178_v57 }
 0x16f   :  { %3514 = vmatprep.subr.bf16.mxu1 %v3731_v5 }
 0x172   :  { %3516 = vmatpush3.bf16.msra.mxu1 %v4186_v58 }
 0x173   :  { %3517 = vmatprep.subr.bf16.mxu1 %v3731_v5 }
 0x176   :  { %3519 = vmatpush3.bf16.msra.mxu1 %v4194_v11 }
 0x177   :  { %3520 = vmatprep.subr.bf16.mxu1 %v3731_v5 }
 0x179   :  { %3143 = vmatmul.mubr.f32.vlgmr.msra.gmra.mrb[0].mxu1 %v4066_v0 }
 0x17a   :  { %3522 = vmatpush3.bf16.msra.mxu1 %v3874_v37  ;;  %3169 = vmatprep.mubr.msk.f32.mxu1 %vm3732_vm0, %v3733_v10 }
 0x17b   :  { %3523 = vmatprep.subr.bf16.mxu1 %v3731_v5 }
 0x17e   :  { %3525 = vmatpush3.bf16.msra.mxu1 %v3893_v50 }
 0x17f   :  { %3526 = vmatprep.subr.bf16.mxu1 %v3731_v5 }
 0x182   :  { %3528 = vmatpush3.bf16.msra.mxu1 %v3900_v52 }
 0x183   :  { %3529 = vmatprep.subr.bf16.mxu1 %v3731_v5 }
 0x186   :  { %3531 = vmatpush3.bf16.msra.mxu1 %v3944_v62 }
 0x187   :  { %3532 = vmatprep.subr.bf16.mxu1 %v3731_v5 }
 0x18a   :  { %3534 = vmatpush3.bf16.msra.mxu1 %v3954_v3 }
 0x18b   :  { %3535 = vmatprep.subr.bf16.mxu1 %v3731_v5 }
 0x18e   :  { %3537 = vmatpush3.bf16.msra.mxu1 %v3964_v9 }
 0x18f   :  { %3538 = vmatprep.subr.bf16.mxu1 %v3731_v5 }
 0x191   :  { %3170 = vmatmul.mubr.f32.vlgmr.msra.gmra.mrb[0].mxu1 %v4066_v0 }
 0x192   :  { %3540 = vmatpush3.bf16.msra.mxu1 %v3874_v37  ;;  %3226 = vmatprep.mubr.msk.f32.mxu1 %vm3732_vm0, %v3733_v10 }
 0x193   :  { %3541 = vmatprep.subr.bf16.mxu1 %v3731_v5 }
 0x196   :  { %3543 = vmatpush3.bf16.msra.mxu1 %v3893_v50 }
 0x197   :  { %3544 = vmatprep.subr.bf16.mxu1 %v3731_v5 }
 0x19a   :  { %3546 = vmatpush3.bf16.msra.mxu1 %v3900_v52 }
 0x19b   :  { %3547 = vmatprep.subr.bf16.mxu1 %v3731_v5 }
 0x19e   :  { %3549 = vmatpush3.bf16.msra.mxu1 %v3944_v62 }
 0x19f   :  { %3550 = vmatprep.subr.bf16.mxu1 %v3731_v5 }
 0x1a2   :  { %3552 = vmatpush3.bf16.msra.mxu1 %v3954_v3 }
 0x1a3   :  { %3553 = vmatprep.subr.bf16.mxu1 %v3731_v5 }
 0x1a6   :  { %3555 = vmatpush3.bf16.msra.mxu1 %v3964_v9 }
 0x1a7   :  { %3364 = vmatprep.subr.mxu1 %v3733_v10 }
 0x264   :  { %v1135_v19 = vpop.f32.mrb[0].mxu1 }
 0x265   :  { %v1139_v23 = vmul.f32 0.020833334, %v1135_v19  ;;  %v3171_v24 = vpop.f32.mrb[1].mxu1  ;;  %v2732_v19 = vld [vmem:[%s4404_s8] ss:$0 sm:$0xff] }
 0x266   :  { %v2733_v24 = vld [vmem:[%s4405_s9] ss:$0 sm:$0xff] }
 0x267   :  { %v1143_v29 = vsel %vm1141_vm4, %v1139_v23, 0 }
 0x268   :  { %v1215_v39 = vand.u32 4294901760, %v1143_v29 }
 0x26a   :  { %v1216_v40 = vsub.f32 %v1143_v29, %v1215_v39 }
 0x26c   :  { %v1217_v60 = vand.u32 4294901760, %v1216_v40 }
 0x26e   :  { %v1218_v61 = vsub.f32 %v1216_v40, %v1217_v60 }
 0x270   :  { %v1219_v32 = vand.u32 4294901760, %v1218_v61 }
 0x272   :  { %3175 = vmatmul.mubr.f32.vlgmr.msra.gmra.mrb[2].mxu0 %v1219_v32 }
 0x273   :  { %3178 = vmatpush3.msra.mxu0 %v4245_v28  ;;  %3179 = vmatprep.mubr.msk.f32.mxu0 %vm3732_vm0, %v3733_v10 }
 0x274   :  { %3182 = vmatprep.subr.mxu0 %v3733_v10 }
 0x27a   :  { %3180 = vmatmul.mubr.f32.vlgmr.msra.gmra.mrb[2].mxu0 %v1215_v39 }
 0x27b   :  { %3183 = vmatpush3.msra.mxu0 %v4237_v17  ;;  %3184 = vmatprep.mubr.msk.f32.mxu0 %vm3732_vm0, %v3733_v10 }
 0x27c   :  { %3187 = vmatprep.subr.mxu0 %v3733_v10 }
 0x282   :  { %3185 = vmatmul.mubr.f32.vlgmr.msra.gmra.mrb[2].mxu0 %v1216_v40 }
 0x283   :  { %3188 = vmatpush3.msra.mxu0 %v4232_v15  ;;  %3189 = vmatprep.mubr.msk.f32.mxu0 %vm3732_vm0, %v3733_v10 }
 0x284   :  { %3192 = vmatprep.subr.mxu0 %v3733_v10 }
 0x28a   :  { %3190 = vmatmul.mubr.f32.vlgmr.msra.gmra.mrb[2].mxu0 %v1217_v60 }
 0x28b   :  { %3193 = vmatpush3.msra.mxu0 %v4241_v30  ;;  %3194 = vmatprep.mubr.msk.f32.mxu0 %vm3732_vm0, %v3733_v10 }
 0x28c   :  { %3197 = vmatprep.subr.mxu0 %v3733_v10 }
 0x292   :  { %3195 = vmatmul.mubr.f32.vlgmr.msra.gmra.mrb[2].mxu0 %v1215_v39 }
 0x293   :  { %3198 = vmatpush3.msra.mxu0 %v4232_v15  ;;  %3199 = vmatprep.mubr.msk.f32.mxu0 %vm3732_vm0, %v3733_v10 }
 0x294   :  { %3556 = vmatprep.subr.bf16.mxu0 %v3731_v5 }
 0x29a   :  { %3200 = vmatmul.mubr.f32.vlgmr.msra.gmra.mrb[2].mxu0 %v1215_v39 }
 0x29b   :  { %3558 = vmatpush3.bf16.msra.mxu0 %v4081_v8  ;;  %3253 = vmatprep.mubr.msk.f32.mxu0 %vm3732_vm0, %v3733_v10 }
 0x29c   :  { %3559 = vmatprep.subr.bf16.mxu0 %v3731_v5 }
 0x29f   :  { %3561 = vmatpush3.bf16.msra.mxu0 %v4090_v27 }
 0x2a0   :  { %3562 = vmatprep.subr.bf16.mxu0 %v3731_v5 }
 0x2a3   :  { %3564 = vmatpush3.bf16.msra.mxu0 %v4096_v45  ;;  %v2730_v45 = vld [vmem:[%s4402_s5] ss:$0 sm:$0xff] }
 0x2a4   :  { %3565 = vmatprep.subr.bf16.mxu0 %v3731_v5 }
 0x2a7   :  { %3567 = vmatpush3.bf16.msra.mxu0 %v3996_v31 }
 0x2a8   :  { %3568 = vmatprep.subr.bf16.mxu0 %v3731_v5 }
 0x2ab   :  { %3570 = vmatpush3.bf16.msra.mxu0 %v4000_v41 }
 0x2ac   :  { %3571 = vmatprep.subr.bf16.mxu0 %v3731_v5 }
 0x2af   :  { %3573 = vmatpush3.bf16.msra.mxu0 %v4008_v51 }
 0x2b0   :  { %3574 = vmatprep.subr.bf16.mxu0 %v3731_v5 }
 0x36d   :  { %v1591_v42 = vpop.f32.mrb[2].mxu0 }
 0x36e   :  { %v4282_v33 = vsub.f32 %v4044_v13, %v1591_v42  ;;  %v3201_v43 = vpop.f32.mrb[3].mxu0 }
 0x370   :  { %v1596_v63 = vmul.f32 %v4282_v33, %v4282_v33 }
 0x372   :  { %v1598_v31 = vsel %vm546_vm2, %v1596_v63, 0 }
 0x373   :  { %v4287_v0 = vand.u32 4294901760, %v1598_v31 }
 0x375   :  { %v1678_v41 = vsub.f32 %v1598_v31, %v4287_v0  ;;  %3254 = vmatmul.mubr.f32.vlgmr.msra.gmra.mrb[4].mxu0 %v4287_v0 }
 0x376   :  { %3576 = vmatpush3.bf16.msra.mxu0 %v4108_v47  ;;  %3280 = vmatprep.mubr.msk.f32.mxu0 %vm3732_vm0, %v3733_v10 }
 0x377   :  { %3577 = vmatprep.subr.bf16.mxu0 %v3731_v5  ;;  %v1679_v51 = vand.u32 4294901760, %v1678_v41 }
 0x379   :  { %v1680_v13 = vsub.f32 %v1678_v41, %v1679_v51 }
 0x37a   :  { %3579 = vmatpush3.bf16.msra.mxu0 %v4115_v48 }
 0x37b   :  { %3580 = vmatprep.subr.bf16.mxu0 %v3731_v5  ;;  %v1681_v1 = vand.u32 4294901760, %v1680_v13 }
 0x37d   :  { %3227 = vmatmul.mubr.f32.vlgmr.msra.gmra.mrb[2].mxu1 %v1681_v1 }
 0x37e   :  { %3582 = vmatpush3.bf16.msra.mxu0 %v4123_v49  ;;  %3365 = vmatpush3.msra.mxu1 %v4232_v15 }
 0x37f   :  { %3583 = vmatprep.subr.bf16.mxu0 %v3731_v5  ;;  %3366 = vmatprep.mubr.msk.f32.mxu1 %vm3732_vm0, %v3733_v10 }
 0x380   :  { %3369 = vmatprep.subr.mxu1 %v3733_v10 }
 0x382   :  { %3585 = vmatpush3.bf16.msra.mxu0 %v4012_v53  ;;  %v2665_v53 = vlaneseq }
 0x383   :  { %3586 = vmatprep.subr.bf16.mxu0 %v3731_v5 }
 0x386   :  { %3588 = vmatpush3.bf16.msra.mxu0 %v4016_v54  ;;  %v2731_v54 = vld [vmem:[#allocation3] ss:$0 sm:$0xff] }
 0x387   :  { %3589 = vmatprep.subr.bf16.mxu0 %v3731_v5 }
 0x38a   :  { %3591 = vmatpush3.bf16.msra.mxu0 %v4020_v55  ;;  %v3734_v55 = vmov 0  }
 0x38b   :  { %3592 = vmatprep.subr.bf16.mxu0 %v3731_v5  ;;  %3701 = vset.pattern.permute.xlu0 %v3734_v55 }
 0x38c   :  { %3702 = vset.pattern.permute.xlu1 %v3734_v55 }
 0x38d   :  { %3281 = vmatmul.mubr.f32.vlgmr.msra.gmra.mrb[4].mxu0 %v1678_v41  ;;  %2693 = vperm.xlu1 %3702, %v2731_v54  }
 0x38e   :  { %3594 = vmatpush3.bf16.msra.mxu0 %v3874_v37  ;;  %3307 = vmatprep.mubr.msk.f32.mxu0 %vm3732_vm0, %v3733_v10 }
 0x38f   :  { %3595 = vmatprep.subr.bf16.mxu0 %v3731_v5 }
 0x392   :  { %3597 = vmatpush3.bf16.msra.mxu0 %v3893_v50 }
 0x393   :  { %3598 = vmatprep.subr.bf16.mxu0 %v3731_v5 }
 0x396   :  { %3600 = vmatpush3.bf16.msra.mxu0 %v3900_v52 }
 0x397   :  { %3601 = vmatprep.subr.bf16.mxu0 %v3731_v5 }
 0x39a   :  { %3603 = vmatpush3.bf16.msra.mxu0 %v3944_v62 }
 0x39b   :  { %3604 = vmatprep.subr.bf16.mxu0 %v3731_v5 }
 0x39e   :  { %3606 = vmatpush3.bf16.msra.mxu0 %v3954_v3 }
 0x39f   :  { %3607 = vmatprep.subr.bf16.mxu0 %v3731_v5 }
 0x3a2   :  { %3609 = vmatpush3.bf16.msra.mxu0 %v3964_v9 }
 0x3a3   :  { %3610 = vmatprep.subr.bf16.mxu0 %v3731_v5 }
 0x3a5   :  { %3308 = vmatmul.mubr.f32.vlgmr.msra.gmra.mrb[4].mxu0 %v1679_v51 }
 0x3a6   :  { %3612 = vmatpush3.bf16.msra.mxu0 %v4152_v18  ;;  %3334 = vmatprep.mubr.msk.f32.mxu0 %vm3732_vm0, %v3733_v10 }
 0x3a7   :  { %3613 = vmatprep.subr.bf16.mxu0 %v3731_v5 }
 0x3aa   :  { %3615 = vmatpush3.bf16.msra.mxu0 %v4160_v22 }
 0x3ab   :  { %3616 = vmatprep.subr.bf16.mxu0 %v3731_v5 }
 0x3ae   :  { %3618 = vmatpush3.bf16.msra.mxu0 %v4170_v56 }
 0x3af   :  { %3619 = vmatprep.subr.bf16.mxu0 %v3731_v5 }
 0x3b2   :  { %3621 = vmatpush3.bf16.msra.mxu0 %v4178_v57 }
 0x3b3   :  { %3622 = vmatprep.subr.bf16.mxu0 %v3731_v5 }
 0x3b6   :  { %3624 = vmatpush3.bf16.msra.mxu0 %v4186_v58 }
 0x3b7   :  { %3625 = vmatprep.subr.bf16.mxu0 %v3731_v5 }
 0x3ba   :  { %3627 = vmatpush3.bf16.msra.mxu0 %v4194_v11 }
 0x3bb   :  { %3628 = vmatprep.subr.bf16.mxu0 %v3731_v5 }
 0x3bd   :  { %3335 = vmatmul.mubr.f32.vlgmr.msra.gmra.mrb[4].mxu0 %v4287_v0 }
 0x3be   :  { %3630 = vmatpush3.bf16.msra.mxu0 %v3874_v37  ;;  %3361 = vmatprep.mubr.msk.f32.mxu0 %vm3732_vm0, %v3733_v10 }
 0x3bf   :  { %3631 = vmatprep.subr.bf16.mxu0 %v3731_v5 }
 0x3c2   :  { %3633 = vmatpush3.bf16.msra.mxu0 %v3893_v50 }
 0x3c3   :  { %3634 = vmatprep.subr.bf16.mxu0 %v3731_v5 }
 0x3c6   :  { %3636 = vmatpush3.bf16.msra.mxu0 %v3900_v52  ;;  %v2666_v52 = vshrl.u32 %v2665_v53, 7 }
 0x3c7   :  { %3637 = vmatprep.subr.bf16.mxu0 %v3731_v5 }
 0x3c8   :  { %v2667_v2 = vsub.s32 0, %v2666_v52 }
 0x3ca   :  { %3639 = vmatpush3.bf16.msra.mxu0 %v3944_v62  ;;  %v2657_v62 = vld [vmem:[#allocation2] sm:$0x1] }
 0x3cb   :  { %3640 = vmatprep.subr.bf16.mxu0 %v3731_v5  ;;  %v2674_v4 = vsub.f32 1.0, %v2657_v62  ;;  %v2668_v6 = vrot.slane %v2657_v62, %v2667_v2 }
 0x3cd   :  { %2670 = vperm.xlu0 %3701, %v2668_v6  }
 0x3ce   :  { %3642 = vmatpush3.bf16.msra.mxu0 %v3954_v3  ;;  %v2679_v3 = vrot.slane %v2674_v4, %v2667_v2 }
 0x3cf   :  { %3643 = vmatprep.subr.bf16.mxu0 %v3731_v5 }
 0x3d1   :  { %2681 = vperm.xlu0 %3701, %v2679_v3  }
 0x3d2   :  { %3645 = vmatpush3.bf16.msra.mxu0 %v3964_v9 }
 0x3d5   :  { %3362 = vmatmul.mubr.f32.vlgmr.msra.gmra.mrb[4].mxu0 %v4287_v0 }
 0x44c   :  { %v2671_v18 = vpop.permute.xlu0 %2670 }
 0x450   :  { %v1683_v37 = vpop.f32.mrb[2].mxu1  ;;  %v2682_v58 = vpop.permute.xlu0 %2681 }
 0x451   :  { %v3228_v50 = vpop.f32.mrb[3].mxu1 }
 0x4a8   :  { %v2185_v5 = vpop.f32.mrb[4].mxu0 }
 0x4a9   :  { %v3646_v9 = vadd.f32 %v2185_v5, %v1683_v37  ;;  %v3363_v34 = vpop.f32.mrb[5].mxu0 }
 0x4ab   :  { %v2189_v44 = vmul.f32 0.020833334, %v3646_v9 }
 0x4ad   :  { %v2191_v38 = vsel %vm1141_vm4, %v2189_v44, 0 }
 0x4ae   :  { %v2259_v46 = vand.u32 4294901760, %v2191_v38 }
 0x4b0   :  { %v2260_v7 = vsub.f32 %v2191_v38, %v2259_v46 }
 0x4b2   :  { %v2261_v8 = vand.u32 4294901760, %v2260_v7 }
 0x4b4   :  { %v2262_v16 = vsub.f32 %v2260_v7, %v2261_v8 }
 0x4b6   :  { %v2263_v20 = vand.u32 4294901760, %v2262_v16 }
 0x4b8   :  { %3367 = vmatmul.mubr.f32.vlgmr.msra.gmra.mrb[4].mxu1 %v2263_v20 }
 0x4b9   :  { %3370 = vmatpush3.msra.mxu1 %v4245_v28  ;;  %3371 = vmatprep.mubr.msk.f32.mxu1 %vm3732_vm0, %v3733_v10 }
 0x4ba   :  { %3374 = vmatprep.subr.mxu1 %v3733_v10 }
 0x4c0   :  { %3372 = vmatmul.mubr.f32.vlgmr.msra.gmra.mrb[4].mxu1 %v2259_v46 }
 0x4c1   :  { %3375 = vmatpush3.msra.mxu1 %v4237_v17  ;;  %3376 = vmatprep.mubr.msk.f32.mxu1 %vm3732_vm0, %v3733_v10 }
 0x4c2   :  { %3379 = vmatprep.subr.mxu1 %v3733_v10 }
 0x4c8   :  { %3377 = vmatmul.mubr.f32.vlgmr.msra.gmra.mrb[4].mxu1 %v2260_v7 }
 0x4c9   :  { %3380 = vmatpush3.msra.mxu1 %v4232_v15  ;;  %3381 = vmatprep.mubr.msk.f32.mxu1 %vm3732_vm0, %v3733_v10 }
 0x4ca   :  { %3384 = vmatprep.subr.mxu1 %v3733_v10 }
 0x4d0   :  { %3382 = vmatmul.mubr.f32.vlgmr.msra.gmra.mrb[4].mxu1 %v2261_v8 }
 0x4d1   :  { %3385 = vmatpush3.msra.mxu1 %v4241_v30  ;;  %3386 = vmatprep.mubr.msk.f32.mxu1 %vm3732_vm0, %v3733_v10 }
 0x4d2   :  { %3389 = vmatprep.subr.mxu1 %v3733_v10 }
 0x4d8   :  { %3387 = vmatmul.mubr.f32.vlgmr.msra.gmra.mrb[4].mxu1 %v2259_v46 }
 0x4d9   :  { %3390 = vmatpush3.msra.mxu1 %v4232_v15  ;;  %3391 = vmatprep.mubr.msk.f32.mxu1 %vm3732_vm0, %v3733_v10  ;;  %v2694_v15 = vpop.permute.xlu1 %2693 }
 0x4e0   :  { %3392 = vmatmul.mubr.f32.vlgmr.msra.gmra.mrb[4].mxu1 %v2259_v46 }
 0x5b3   :  { %v2635_v21 = vpop.f32.mrb[4].mxu1 }
 0x5b4   :  { %v3647_v25 = vadd.f32 1e-05, %v2635_v21  ;;  %v3393_v26 = vpop.f32.mrb[5].mxu1 }
 0x5b6   :  { %3703 = vrsqrt.f32 %v3647_v25 }
 0x5c0   :  { %v3704_v27 = vpop.eup %3703 }
 0x5c1   :  { %v2640_v36 = vmul.f32 %v3704_v27, %v4282_v33 }
 0x5c3   :  { %v2648_v47 = vmul.f32 %v2729_v35, %v2640_v36 }
 0x5c5   :  { %v2656_v48 = vadd.f32 %v2730_v45, %v2648_v47 }
 0x5c7   :  { %3705 = vtanh.f32 %v2656_v48  ;;  %v2658_v10 = vadd.f32 3.0, %v2656_v48 }
 0x5c9   :  { %v2659_v49 = vmax.f32 %v2658_v10, 0.0 }
 0x5cb   :  { %v2660_v22 = vmin.f32 %v2659_v49, 6.0 }
 0x5cd   :  { %v2661_v56 = vmul.f32 %v2660_v22, %v2656_v48 }
 0x5cf   :  { %v2662_v57 = vmul.f32 0.16666667, %v2661_v56 }
 0x5d1   :  { %v3706_v11 = vpop.eup %3705  ;;  %v2684_v12 = vmul.f32 %v2682_v58, %v2662_v57 }
 0x5d2   :  { %v2673_v14 = vmul.f32 %v3706_v11, %v2671_v18 }
 0x5d4   :  { %v2685_v17 = vadd.f32 %v2684_v12, %v2673_v14 }
 0x5d6   :  { %v2696_v23 = vmul.f32 %v2694_v15, %v2685_v17 }
 0x5d8   :  { %v2704_v29 = vmul.f32 %v2732_v19, %v2696_v23 }
 0x5da   :  { %v2712_v30 = vadd.f32 %v2733_v24, %v2704_v29 }
 0x5dc   :  { %2714 = vst.msk [vmem:[#allocation4] sm:$0x3] %vm2713_vm5, %v2712_v30 }
 0x5dd   :  { %3718 = shalt.err (!%p3715_p4)
}
 0x5de   :  { %s3719_s13 = scalar_lea.hbm %s4406_s10, 32 }
 0x5df   :  { %p3720_p5 = scmp.ne.s32.totalorder %s4406_s10, %s3719_s13  ;;  %p3723_p6 = scmp.lt.u32.totalorder %s3719_s13, %s4406_s10 }
 0x5e1   :  { %p3725_p7 = pnand %p3723_p6, %p3720_p5 }
 0x5e3   :  { %3728 = shalt.err (!%p3725_p7)
}
 0x5e4   :  { %2724 = dma.vmem_to_hbm [thread:$0]  %s2722_s30, 32, %s4406_s10, [#allocation5]  }
 0x5e5   :  { %3729 = dma.done.wait [#allocation5], 32  }
 0x5e6   :  { %3730 = vsyncadd [#allocation5], 4294967264 }
 0x5e7   :  { %2728 = vsyncpa [#allocation5], 1 }

</bundles_post_ra>
